<compile_context>
chip_gen: v7x
topology: tpu7x:2x2x1
jax: 0.10.0
libtpu: 0.0.40
codegen_flags: <defaults>
</compile_context>

<pallas_src>
import functools

import jax
import jax.numpy as jnp
from jax import lax
from jax.experimental import pallas as pl
from jax.experimental.pallas import tpu as pltpu

# ---------------- hyper-params (args.* in the original script) ----------------
K = 3          # args.K  (number of propagation hops)
HIDDEN = 32    # args.hidden
# args.dropout is irrelevant at inference (training=False -> identity).


# ------------------------------- Pallas kernel --------------------------------
def dagnn_kernel(x_ref, a_ref, w1_ref, b1_ref, w2_ref, b2_ref, pw_ref, pb_ref,
                 out_ref, *, k_hops, num_classes):
    f32 = jnp.float32
    bf16 = jnp.bfloat16

    x = x_ref[...]            # [N, F]    bf16
    a = a_ref[...]            # [N, N]    bf16   normalized adjacency
    w1 = w1_ref[...]          # [F, Hp]   bf16   (zero padded H -> Hp)
    w2 = w2_ref[...]          # [Hp, Cp]  bf16   (zero padded C -> Cp)
    b1 = b1_ref[...]          # [1, Hp]   f32
    b2 = b2_ref[...]          # [1, Cp]   f32
    pw = pw_ref[...]          # [1, Cp]   f32    proj weight as a row vector
    pb = pb_ref[...]          # [1, 1]    f32    proj bias

    # lin1 + relu  (MXU bf16 operands, f32 accumulation)
    h = jnp.dot(x, w1, preferred_element_type=f32) + b1
    h = jnp.maximum(h, 0.0)
    # lin2 -> z0  (padded class lanes are exactly zero: W2/b2 padded with zeros)
    z = jnp.dot(h.astype(bf16), w2, preferred_element_type=f32)        # [N, Cp]
    z = z + b2

    # retain score + fused accumulation:
    #   s = sigmoid(<z, pw> + pb)   (VPU mul + XLU lane reduce, no MXU)
    #   out += s * z
    def retain_accumulate(out_acc, z_cur):
        t = jnp.sum(z_cur * pw, axis=1, keepdims=True) + pb            # [N, 1]
        s = pl.reciprocal(1.0 + jnp.exp(-t), approx=True)              # sigmoid
        return out_acc + s * z_cur

    out = retain_accumulate(jnp.zeros_like(z), z)

    # K propagation hops: z_k = A_hat @ z_{k-1}, accumulate on the fly.
    for _ in range(k_hops):
        z = jnp.dot(a, z.astype(bf16), preferred_element_type=f32)
        out = retain_accumulate(out, z)

    # log_softmax over the real classes only (mask the padded lanes).
    col = lax.broadcasted_iota(jnp.int32, out.shape, 1)
    masked = jnp.where(col < num_classes, out, jnp.float32(-1e30))
    m = jnp.max(masked, axis=1, keepdims=True)
    e = jnp.exp(masked - m)
    lse = jnp.log(jnp.sum(e, axis=1, keepdims=True))
    out_ref[...] = out - m - lse        # padded lanes hold garbage; sliced off.


# --------------------------------- wrapper ------------------------------------
def _round_up(v, m):
    return ((v + m - 1) // m) * m


def dagnn_forward(x, a_hat, w1, b1, w2, b2, pw, pb, *, k_hops=K):
    n, f = x.shape
    h = w1.shape[1]
    c = w2.shape[1]

    n_p = _round_up(n, 8)        # sublane alignment
    h_p = _round_up(h, 128)      # lane-dense hidden
    c_p = _round_up(c, 128)      # lane-dense classes (key perf lever)

    def pad2(arr, rows, cols):
        return jnp.pad(arr, ((0, rows - arr.shape[0]), (0, cols - arr.shape[1])))

    # MXU operands -> bf16 (halves A_hat HBM/VMEM footprint); the rest stays f32.
    x_p = pad2(x, n_p, f).astype(jnp.bfloat16)
    a_p = pad2(a_hat, n_p, n_p).astype(jnp.bfloat16)
    w1_p = pad2(w1, f, h_p).astype(jnp.bfloat16)
    b1_p = pad2(b1, 1, h_p).astype(jnp.float32)
    w2_p = pad2(w2, h_p, c_p).astype(jnp.bfloat16)
    b2_p = pad2(b2, 1, c_p).astype(jnp.float32)
    pw_row = pad2(pw.T, 1, c_p).astype(jnp.float32)      # (C,1) -> (1,Cp), zero pad
    pb_p = pb.astype(jnp.float32)

    def spec(shape):
        return pl.BlockSpec(shape, lambda i: (0,) * len(shape))

    kernel = functools.partial(dagnn_kernel, k_hops=k_hops, num_classes=c)
    out_p = pl.pallas_call(
        kernel,
        out_shape=jax.ShapeDtypeStruct((n_p, c_p), jnp.float32),
        grid=(1,),
        in_specs=[
            spec((n_p, f)),        # x
            spec((n_p, n_p)),      # A_hat
            spec((f, h_p)),        # W1^T
            spec((1, h_p)),        # b1
            spec((h_p, c_p)),      # W2^T
            spec((1, c_p)),        # b2
            spec((1, c_p)),        # proj weight (row)
            spec((1, 1)),          # proj bias
        ],
        out_specs=spec((n_p, c_p)),
        compiler_params=pltpu.CompilerParams(
            dimension_semantics=("arbitrary",)),
    )(x_p, a_p, w1_p, b1_p, w2_p, b2_p, pw_row, pb_p)

    return out_p[:n, :c]


# -------------------- gcn_norm (dense adjacency) — plain JAX glue -------------
def gcn_norm_dense(edge_index, num_nodes):
    """Dense D^{-1/2}(A + I)D^{-1/2} with propagation convention out = M @ x,
    M[target, source] = deg_inv_sqrt[source] * w * deg_inv_sqrt[target]."""
    row, col = edge_index[0], edge_index[1]
    sl = jnp.arange(num_nodes, dtype=edge_index.dtype)
    row = jnp.concatenate([row, sl])
    col = jnp.concatenate([col, sl])
    w = jnp.ones(row.shape[0], dtype=jnp.float32)
    deg = jnp.zeros((num_nodes,), jnp.float32).at[col].add(w)
    dinv = jnp.where(deg > 0, deg ** -0.5, 0.0)
    norm = dinv[row] * w * dinv[col]
    a = jnp.zeros((num_nodes, num_nodes), jnp.float32).at[col, row].add(norm)
    return a


# ------------------------- pure-JAX references (check) -------------------------
def reference_forward_f32(x, a_hat, w1, b1, w2, b2, pw, pb, *, k_hops=K):
    h = jnp.maximum(x @ w1 + b1, 0.0)
    z = h @ w2 + b2
    preds = [z]
    for _ in range(k_hops):
        z = a_hat @ z
        preds.append(z)
    pps = jnp.stack(preds, axis=1)                                   # [N, K+1, C]
    score = jax.nn.sigmoid(jnp.einsum('nkc,c->nk', pps, pw[:, 0]) + pb[0, 0])
    out = jnp.einsum('nk,nkc->nc', score, pps)
    return jax.nn.log_softmax(out, axis=1)


def reference_forward_bf16(x, a_hat, w1, b1, w2, b2, pw, pb, *, k_hops=K):
    """Emulates the kernel's numerics: bf16 MXU operands, f32 accumulation."""
    bf = jnp.bfloat16

    def dot(a, b):
        return jnp.dot(a.astype(bf), b.astype(bf),
                       preferred_element_type=jnp.float32)

    h = jnp.maximum(dot(x, w1) + b1, 0.0)
    z = dot(h, w2) + b2
    out = jnp.zeros_like(z)
    for k in range(k_hops + 1):
        if k > 0:
            z = dot(a_hat, z)
        s = jax.nn.sigmoid(jnp.sum(z * pw[:, 0][None, :], axis=1,
                                   keepdims=True) + pb[0, 0])
        out = out + s * z
    m = jnp.max(out, axis=1, keepdims=True)
    lse = jnp.log(jnp.sum(jnp.exp(out - m), axis=1, keepdims=True))
    return out - m - lse


# ----------------------------------- main --------------------------------------
if __name__ == "__main__":
    key = jax.random.PRNGKey(0)
    N, F, H, C = 16, 16, HIDDEN, 8    # nodes, features, hidden, classes

    k_x, k_w1, k_b1, k_w2, k_b2, k_pw, k_pb = jax.random.split(key, 7)

    x = jax.random.normal(k_x, (N, F), jnp.float32)

    # Deterministic parameter init (shapes match the PyTorch module; values synthetic).
    w1 = jax.random.normal(k_w1, (F, H), jnp.float32) * (1.0 / F) ** 0.5   # lin1.weight^T
    b1 = jax.random.normal(k_b1, (1, H), jnp.float32) * 0.1
    w2 = jax.random.normal(k_w2, (H, C), jnp.float32) * (1.0 / H) ** 0.5   # lin2.weight^T
    b2 = jax.random.normal(k_b2, (1, C), jnp.float32) * 0.1
    pw = jax.random.normal(k_pw, (C, 1), jnp.float32) * (1.0 / C) ** 0.5   # prop.proj.weight^T
    pb = jax.random.normal(k_pb, (1, 1), jnp.float32) * 0.1

    # Deterministic graph: bidirectional ring over N nodes (self loops added by gcn_norm).
    src = jnp.arange(N, dtype=jnp.int32)
    dst = (src + 1) % N
    edge_index = jnp.stack(
        [jnp.concatenate([src, dst]), jnp.concatenate([dst, src])], axis=0)

    a_hat = gcn_norm_dense(edge_index, N)

    out = dagnn_forward(x, a_hat, w1, b1, w2, b2, pw, pb)
    out = jax.block_until_ready(out)
    assert out.shape == (N, C)
    assert bool(jnp.all(jnp.isfinite(out)))

    # Tight check vs a reference that mirrors the kernel's bf16/f32 numerics.
    ref_bf16 = reference_forward_bf16(x, a_hat, w1, b1, w2, b2, pw, pb)
    assert jnp.allclose(out, ref_bf16, atol=2e-2, rtol=2e-2), \
        "mismatch vs bf16-emulating JAX reference"
    # Looser semantic check vs the exact f32 reference (bf16 drift expected).
    ref_f32 = reference_forward_f32(x, a_hat, w1, b1, w2, b2, pw, pb)
    assert jnp.allclose(out, ref_f32, atol=1e-1, rtol=1e-1), \
        "mismatch vs f32 JAX reference"

    print("KERNEL_OK")
</pallas_src>

<mosaic_0001>
module attributes {stable_mosaic.version = 11 : i64} {
  func.func @dagnn_kernel(%arg0: i32, %arg1: memref<16x16xbf16, #tpu.memory_space<vmem>>, %arg2: memref<16x16xbf16, #tpu.memory_space<vmem>>, %arg3: memref<16x128xbf16, #tpu.memory_space<vmem>>, %arg4: memref<1x128xf32, #tpu.memory_space<vmem>>, %arg5: memref<128x128xbf16, #tpu.memory_space<vmem>>, %arg6: memref<1x128xf32, #tpu.memory_space<vmem>>, %arg7: memref<1x128xf32, #tpu.memory_space<vmem>>, %arg8: memref<1x1xf32, #tpu.memory_space<vmem>>, %arg9: memref<16x128xf32, #tpu.memory_space<vmem>>) attributes {dimension_semantics = [#tpu.dimension_semantics<arbitrary>], iteration_bounds = array<i64: 1>, scalar_prefetch = 0 : i64, scratch_operands = 0 : i64, tpu.core_type = #tpu.core_type<tc>, window_params = [{pipeline_mode = #tpu.pipeline_mode<synchronous>, transform_indices = @transform_0, window_bounds = array<i64: 16, 16>}, {pipeline_mode = #tpu.pipeline_mode<synchronous>, transform_indices = @transform_1, window_bounds = array<i64: 16, 16>}, {pipeline_mode = #tpu.pipeline_mode<synchronous>, transform_indices = @transform_2, window_bounds = array<i64: 16, 128>}, {pipeline_mode = #tpu.pipeline_mode<synchronous>, transform_indices = @transform_3, window_bounds = array<i64: 1, 128>}, {pipeline_mode = #tpu.pipeline_mode<synchronous>, transform_indices = @transform_4, window_bounds = array<i64: 128, 128>}, {pipeline_mode = #tpu.pipeline_mode<synchronous>, transform_indices = @transform_5, window_bounds = array<i64: 1, 128>}, {pipeline_mode = #tpu.pipeline_mode<synchronous>, transform_indices = @transform_6, window_bounds = array<i64: 1, 128>}, {pipeline_mode = #tpu.pipeline_mode<synchronous>, transform_indices = @transform_7, window_bounds = array<i64: 1, 1>}, {pipeline_mode = #tpu.pipeline_mode<synchronous>, transform_indices = @transform_8, window_bounds = array<i64: 16, 128>}]} {
    %c0 = arith.constant 0 : index
    %c0_0 = arith.constant 0 : index
    %0 = vector.load %arg1[%c0, %c0_0] : memref<16x16xbf16, #tpu.memory_space<vmem>>, vector<16x16xbf16>
    %c0_1 = arith.constant 0 : index
    %c0_2 = arith.constant 0 : index
    %1 = vector.load %arg2[%c0_1, %c0_2] : memref<16x16xbf16, #tpu.memory_space<vmem>>, vector<16x16xbf16>
    %c0_3 = arith.constant 0 : index
    %c0_4 = arith.constant 0 : index
    %2 = vector.load %arg3[%c0_3, %c0_4] : memref<16x128xbf16, #tpu.memory_space<vmem>>, vector<16x128xbf16>
    %c0_5 = arith.constant 0 : index
    %c0_6 = arith.constant 0 : index
    %3 = vector.load %arg5[%c0_5, %c0_6] : memref<128x128xbf16, #tpu.memory_space<vmem>>, vector<128x128xbf16>
    %c0_7 = arith.constant 0 : index
    %c0_8 = arith.constant 0 : index
    %4 = vector.load %arg4[%c0_7, %c0_8] : memref<1x128xf32, #tpu.memory_space<vmem>>, vector<1x128xf32>
    %c0_9 = arith.constant 0 : index
    %c0_10 = arith.constant 0 : index
    %5 = vector.load %arg6[%c0_9, %c0_10] : memref<1x128xf32, #tpu.memory_space<vmem>>, vector<1x128xf32>
    %c0_11 = arith.constant 0 : index
    %c0_12 = arith.constant 0 : index
    %6 = vector.load %arg7[%c0_11, %c0_12] : memref<1x128xf32, #tpu.memory_space<vmem>>, vector<1x128xf32>
    %c0_13 = arith.constant 0 : index
    %c0_14 = arith.constant 0 : index
    %7 = vector.load %arg8[%c0_13, %c0_14] : memref<1x1xf32, #tpu.memory_space<vmem>>, vector<1x1xf32>
    %cst = arith.constant dense<0.000000e+00> : vector<16x128xf32>
    %8 = tpu.matmul %0, %2, %cst {dimension_numbers = #tpu.dot_dimension_numbers<[1], [0], [0], [1], [0, 0, 1, 1], [], []>} : vector<16x16xbf16>, vector<16x128xbf16>, vector<16x128xf32> -> vector<16x128xf32>
    %9 = vector.broadcast %4 : vector<1x128xf32> to vector<16x128xf32>
    %10 = arith.addf %8, %9 : vector<16x128xf32>
    %cst_15 = arith.constant 0.000000e+00 : f32
    %11 = vector.broadcast %cst_15 : f32 to vector<16x128xf32>
    %12 = arith.maximumf %10, %11 : vector<16x128xf32>
    %13 = arith.truncf %12 : vector<16x128xf32> to vector<16x128xbf16>
    %cst_16 = arith.constant dense<0.000000e+00> : vector<16x128xf32>
    %14 = tpu.matmul %13, %3, %cst_16 {dimension_numbers = #tpu.dot_dimension_numbers<[1], [0], [0], [1], [0, 0, 1, 1], [], []>} : vector<16x128xbf16>, vector<128x128xbf16>, vector<16x128xf32> -> vector<16x128xf32>
    %15 = vector.broadcast %5 : vector<1x128xf32> to vector<16x128xf32>
    %16 = arith.addf %14, %15 : vector<16x128xf32>
    %cst_17 = arith.constant 0.000000e+00 : f32
    %17 = vector.broadcast %cst_17 : f32 to vector<16x128xf32>
    %18 = vector.broadcast %6 : vector<1x128xf32> to vector<16x128xf32>
    %19 = arith.mulf %16, %18 : vector<16x128xf32>
    %cst_18 = arith.constant dense<0.000000e+00> : vector<16xf32>
    %20 = vector.multi_reduction <add>, %19, %cst_18 [1] : vector<16x128xf32> to vector<16xf32>
    %21 = vector.shape_cast %20 : vector<16xf32> to vector<16x1xf32>
    %22 = vector.broadcast %7 : vector<1x1xf32> to vector<16x1xf32>
    %23 = arith.addf %21, %22 : vector<16x1xf32>
    %cst_19 = arith.constant 0.000000e+00 : f32
    %24 = vector.broadcast %cst_19 : f32 to vector<16x1xf32>
    %25 = arith.subf %24, %23 : vector<16x1xf32>
    %26 = math.exp %25 : vector<16x1xf32>
    %cst_20 = arith.constant 1.000000e+00 : f32
    %27 = vector.broadcast %cst_20 : f32 to vector<16x1xf32>
    %28 = arith.addf %27, %26 : vector<16x1xf32>
    %29 = tpu.reciprocal %28 {approx = true} : vector<16x1xf32> -> vector<16x1xf32>
    %30 = vector.broadcast %29 : vector<16x1xf32> to vector<16x128xf32>
    %31 = arith.mulf %30, %16 : vector<16x128xf32>
    %32 = arith.addf %17, %31 : vector<16x128xf32>
    %33 = arith.truncf %16 : vector<16x128xf32> to vector<16x128xbf16>
    %cst_21 = arith.constant dense<0.000000e+00> : vector<16x128xf32>
    %34 = tpu.matmul %1, %33, %cst_21 {dimension_numbers = #tpu.dot_dimension_numbers<[1], [0], [0], [1], [0, 0, 1, 1], [], []>} : vector<16x16xbf16>, vector<16x128xbf16>, vector<16x128xf32> -> vector<16x128xf32>
    %35 = vector.broadcast %6 : vector<1x128xf32> to vector<16x128xf32>
    %36 = arith.mulf %34, %35 : vector<16x128xf32>
    %cst_22 = arith.constant dense<0.000000e+00> : vector<16xf32>
    %37 = vector.multi_reduction <add>, %36, %cst_22 [1] : vector<16x128xf32> to vector<16xf32>
    %38 = vector.shape_cast %37 : vector<16xf32> to vector<16x1xf32>
    %39 = vector.broadcast %7 : vector<1x1xf32> to vector<16x1xf32>
    %40 = arith.addf %38, %39 : vector<16x1xf32>
    %cst_23 = arith.constant 0.000000e+00 : f32
    %41 = vector.broadcast %cst_23 : f32 to vector<16x1xf32>
    %42 = arith.subf %41, %40 : vector<16x1xf32>
    %43 = math.exp %42 : vector<16x1xf32>
    %cst_24 = arith.constant 1.000000e+00 : f32
    %44 = vector.broadcast %cst_24 : f32 to vector<16x1xf32>
    %45 = arith.addf %44, %43 : vector<16x1xf32>
    %46 = tpu.reciprocal %45 {approx = true} : vector<16x1xf32> -> vector<16x1xf32>
    %47 = vector.broadcast %46 : vector<16x1xf32> to vector<16x128xf32>
    %48 = arith.mulf %47, %34 : vector<16x128xf32>
    %49 = arith.addf %32, %48 : vector<16x128xf32>
    %50 = arith.truncf %34 : vector<16x128xf32> to vector<16x128xbf16>
    %cst_25 = arith.constant dense<0.000000e+00> : vector<16x128xf32>
    %51 = tpu.matmul %1, %50, %cst_25 {dimension_numbers = #tpu.dot_dimension_numbers<[1], [0], [0], [1], [0, 0, 1, 1], [], []>} : vector<16x16xbf16>, vector<16x128xbf16>, vector<16x128xf32> -> vector<16x128xf32>
    %52 = vector.broadcast %6 : vector<1x128xf32> to vector<16x128xf32>
    %53 = arith.mulf %51, %52 : vector<16x128xf32>
    %cst_26 = arith.constant dense<0.000000e+00> : vector<16xf32>
    %54 = vector.multi_reduction <add>, %53, %cst_26 [1] : vector<16x128xf32> to vector<16xf32>
    %55 = vector.shape_cast %54 : vector<16xf32> to vector<16x1xf32>
    %56 = vector.broadcast %7 : vector<1x1xf32> to vector<16x1xf32>
    %57 = arith.addf %55, %56 : vector<16x1xf32>
    %cst_27 = arith.constant 0.000000e+00 : f32
    %58 = vector.broadcast %cst_27 : f32 to vector<16x1xf32>
    %59 = arith.subf %58, %57 : vector<16x1xf32>
    %60 = math.exp %59 : vector<16x1xf32>
    %cst_28 = arith.constant 1.000000e+00 : f32
    %61 = vector.broadcast %cst_28 : f32 to vector<16x1xf32>
    %62 = arith.addf %61, %60 : vector<16x1xf32>
    %63 = tpu.reciprocal %62 {approx = true} : vector<16x1xf32> -> vector<16x1xf32>
    %64 = vector.broadcast %63 : vector<16x1xf32> to vector<16x128xf32>
    %65 = arith.mulf %64, %51 : vector<16x128xf32>
    %66 = arith.addf %49, %65 : vector<16x128xf32>
    %67 = arith.truncf %51 : vector<16x128xf32> to vector<16x128xbf16>
    %cst_29 = arith.constant dense<0.000000e+00> : vector<16x128xf32>
    %68 = tpu.matmul %1, %67, %cst_29 {dimension_numbers = #tpu.dot_dimension_numbers<[1], [0], [0], [1], [0, 0, 1, 1], [], []>} : vector<16x16xbf16>, vector<16x128xbf16>, vector<16x128xf32> -> vector<16x128xf32>
    %69 = vector.broadcast %6 : vector<1x128xf32> to vector<16x128xf32>
    %70 = arith.mulf %68, %69 : vector<16x128xf32>
    %cst_30 = arith.constant dense<0.000000e+00> : vector<16xf32>
    %71 = vector.multi_reduction <add>, %70, %cst_30 [1] : vector<16x128xf32> to vector<16xf32>
    %72 = vector.shape_cast %71 : vector<16xf32> to vector<16x1xf32>
    %73 = vector.broadcast %7 : vector<1x1xf32> to vector<16x1xf32>
    %74 = arith.addf %72, %73 : vector<16x1xf32>
    %cst_31 = arith.constant 0.000000e+00 : f32
    %75 = vector.broadcast %cst_31 : f32 to vector<16x1xf32>
    %76 = arith.subf %75, %74 : vector<16x1xf32>
    %77 = math.exp %76 : vector<16x1xf32>
    %cst_32 = arith.constant 1.000000e+00 : f32
    %78 = vector.broadcast %cst_32 : f32 to vector<16x1xf32>
    %79 = arith.addf %78, %77 : vector<16x1xf32>
    %80 = tpu.reciprocal %79 {approx = true} : vector<16x1xf32> -> vector<16x1xf32>
    %81 = vector.broadcast %80 : vector<16x1xf32> to vector<16x128xf32>
    %82 = arith.mulf %81, %68 : vector<16x128xf32>
    %83 = arith.addf %66, %82 : vector<16x128xf32>
    %84 = tpu.iota {dimensions = array<i32: 1>} : vector<16x128xi32>
    %c8_i32 = arith.constant 8 : i32
    %85 = vector.broadcast %c8_i32 : i32 to vector<16x128xi32>
    %86 = arith.cmpi slt, %84, %85 : vector<16x128xi32>
    %cst_33 = arith.constant -1.000000e+30 : f32
    %87 = vector.broadcast %cst_33 : f32 to vector<16x128xf32>
    %88 = arith.select %86, %83, %87 : vector<16x128xi1>, vector<16x128xf32>
    %cst_34 = arith.constant dense<0xFF800000> : vector<16xf32>
    %89 = vector.multi_reduction <maximumf>, %88, %cst_34 [1] : vector<16x128xf32> to vector<16xf32>
    %90 = vector.shape_cast %89 : vector<16xf32> to vector<16x1xf32>
    %91 = vector.broadcast %90 : vector<16x1xf32> to vector<16x128xf32>
    %92 = arith.subf %88, %91 : vector<16x128xf32>
    %93 = math.exp %92 : vector<16x128xf32>
    %cst_35 = arith.constant dense<0.000000e+00> : vector<16xf32>
    %94 = vector.multi_reduction <add>, %93, %cst_35 [1] : vector<16x128xf32> to vector<16xf32>
    %95 = vector.shape_cast %94 : vector<16xf32> to vector<16x1xf32>
    %96 = math.log %95 : vector<16x1xf32>
    %97 = vector.broadcast %90 : vector<16x1xf32> to vector<16x128xf32>
    %98 = arith.subf %83, %97 : vector<16x128xf32>
    %99 = vector.broadcast %96 : vector<16x1xf32> to vector<16x128xf32>
    %100 = arith.subf %98, %99 : vector<16x128xf32>
    %c0_36 = arith.constant 0 : index
    %c0_37 = arith.constant 0 : index
    %101 = vector.load %arg9[%c0_36, %c0_37] : memref<16x128xf32, #tpu.memory_space<vmem>>, vector<16x128xf32>
    tpu.vector_store %arg9[%c0_36, %c0_37], %100 {strides = array<i32>} : memref<16x128xf32, #tpu.memory_space<vmem>>, vector<16x128xf32>,
    return
  }
  func.func @transform_0(%arg0: i32) -> (i32, i32) {
    %c0_i32 = arith.constant 0 : i32
    %c0_i32_0 = arith.constant 0 : i32
    %c0_i32_1 = arith.constant 0 : i32
    return %c0_i32, %c0_i32_0 : i32, i32
  }
  func.func @transform_1(%arg0: i32) -> (i32, i32) {
    %c0_i32 = arith.constant 0 : i32
    %c0_i32_0 = arith.constant 0 : i32
    %c0_i32_1 = arith.constant 0 : i32
    return %c0_i32, %c0_i32_0 : i32, i32
  }
  func.func @transform_2(%arg0: i32) -> (i32, i32) {
    %c0_i32 = arith.constant 0 : i32
    %c0_i32_0 = arith.constant 0 : i32
    %c0_i32_1 = arith.constant 0 : i32
    return %c0_i32, %c0_i32_0 : i32, i32
  }
  func.func @transform_3(%arg0: i32) -> (i32, i32) {
    %c0_i32 = arith.constant 0 : i32
    %c0_i32_0 = arith.constant 0 : i32
    %c0_i32_1 = arith.constant 0 : i32
    return %c0_i32, %c0_i32_0 : i32, i32
  }
  func.func @transform_4(%arg0: i32) -> (i32, i32) {
    %c0_i32 = arith.constant 0 : i32
    %c0_i32_0 = arith.constant 0 : i32
    %c0_i32_1 = arith.constant 0 : i32
    return %c0_i32, %c0_i32_0 : i32, i32
  }
  func.func @transform_5(%arg0: i32) -> (i32, i32) {
    %c0_i32 = arith.constant 0 : i32
    %c0_i32_0 = arith.constant 0 : i32
    %c0_i32_1 = arith.constant 0 : i32
    return %c0_i32, %c0_i32_0 : i32, i32
  }
  func.func @transform_6(%arg0: i32) -> (i32, i32) {
    %c0_i32 = arith.constant 0 : i32
    %c0_i32_0 = arith.constant 0 : i32
    %c0_i32_1 = arith.constant 0 : i32
    return %c0_i32, %c0_i32_0 : i32, i32
  }
  func.func @transform_7(%arg0: i32) -> (i32, i32) {
    %c0_i32 = arith.constant 0 : i32
    %c0_i32_0 = arith.constant 0 : i32
    %c0_i32_1 = arith.constant 0 : i32
    return %c0_i32, %c0_i32_0 : i32, i32
  }
  func.func @transform_8(%arg0: i32) -> (i32, i32) {
    %c0_i32 = arith.constant 0 : i32
    %c0_i32_0 = arith.constant 0 : i32
    %c0_i32_1 = arith.constant 0 : i32
    return %c0_i32, %c0_i32_0 : i32, i32
  }
}

</mosaic_0001>

<bundles_post_ra>
// kernel: tpu_custom_call.1
= control target key start
LH: loop header
LB: loop body
LE: loop exit
PB: predicated region body
PF: predicated region fallthrough
CT: control target
= control target key end

     0   :  { %s1038_s0 = inlined_call_operand.hbm [shape: bf16[16,16], index: 0, kind: input, shape index: {}]   ;;  %s1039_s1 = inlined_call_operand.hbm [shape: bf16[16,16], index: 1, kind: input, shape index: {}]   ;;  %s1040_s2 = inlined_call_operand.vmem [shape: bf16[16,128], index: 2, kind: input, shape index: {}]   ;;  %s1041_s3 = inlined_call_operand.vmem [shape: f32[1,128], index: 3, kind: input, shape index: {}]   ;;  %s1042_s4 = inlined_call_operand.hbm [shape: bf16[128,128], index: 4, kind: input, shape index: {}]   ;;  %s1043_s5 = inlined_call_operand.vmem [shape: f32[1,128], index: 5, kind: input, shape index: {}]   ;;  %s1044_s6 = inlined_call_operand.vmem [shape: f32[1,128], index: 6, kind: input, shape index: {}]   ;;  %s1045_s7 = inlined_call_operand.<no memory space> [shape: f32[1,1], index: 7, kind: input, shape index: {}]   ;;  %s1046_s8 = inlined_call_operand.hbm [shape: f32[16,128], index: 8, kind: output, shape index: {}]  }
   0x1   :  { %v13_v0 = vstv %s1045_s7 }
   0x2   :  { %14 = vst [vmem:[#allocation2] sm:$0x1] %v13_v0 }
   0x3   :  { %15 = vsyncpa [#allocation4], 0 }
   0x4   :  { %16 = vsyncpa [#allocation7], 0 }
   0x5   :  { %17 = vsyncpa [#allocation5], 0  ;;  %s819_s29 = smov [#allocation6]   ;;  %s820_s9 = smov [#allocation3]  }
   0x6   :  { %s35_s30 = sshll.u32 %s819_s29, 4  ;;  %s23_s10 = sshll.u32 %s820_s9, 4  ;;  %s36_s30 = int_to_ptr.vmem [resolvable:$true] %s35_s30  ;;  %s878_s10 = int_to_ptr.vmem [resolvable:$true] %s23_s10 }
   0x7   :  { %s725_s13 = scalar_lea.hbm %s1039_s1, 128 }
   0x8   :  { %p726_p0 = scmp.ne.s32.totalorder %s1039_s1, %s725_s13  ;;  %p729_p1 = scmp.lt.u32.totalorder %s725_s13, %s1039_s1 }
   0xa   :  { %p731_p2 = pnand %p729_p1, %p726_p0 }
   0xc   :  { %734 = shalt.err (!%p731_p2)
}
   0xd   :  { %s735_s17 = scalar_lea.vmem %s36_s30, 128  ;;  %p740_p4 = scmp.lt.s32.totalorder %s36_s30, %s36_s30 }
   0xe   :  { %p736_p3 = scmp.ne.s32.totalorder %s36_s30, %s735_s17  ;;  %p741_p5 = scmp.lt.s32.totalorder %s735_s17, %s735_s17 }
  0x10   :  { %p742_p6 = por %p741_p5, %p740_p4 }
  0x12   :  { %p743_p7 = pnand %p742_p6, %p736_p3 }
  0x14   :  { %746 = shalt.err (!%p743_p7)
}
  0x15   :  { %s821_s18 = smov 64   ;;  %s822_s19 = smov 4  }
  0x16   :  { %41 = dma.hbm_to_vmem [thread:$0]  %s1039_s1, 128, %s36_s30, [#allocation7], %s821_s18, %s821_s18, %s822_s19  }
  0x17   :  { %s747_s24 = scalar_lea.hbm %s1038_s0, 128 }
  0x18   :  { %p748_p8 = scmp.ne.s32.totalorder %s1038_s0, %s747_s24  ;;  %p751_p9 = scmp.lt.u32.totalorder %s747_s24, %s1038_s0 }
  0x1a   :  { %p753_p10 = pnand %p751_p9, %p748_p8 }
  0x1c   :  { %756 = shalt.err (!%p753_p10)
}
  0x1d   :  { %s757_s29 = scalar_lea.vmem %s878_s10, 128  ;;  %p762_p12 = scmp.lt.s32.totalorder %s878_s10, %s878_s10 }
  0x1e   :  { %p758_p11 = scmp.ne.s32.totalorder %s878_s10, %s757_s29  ;;  %p763_p13 = scmp.lt.s32.totalorder %s757_s29, %s757_s29 }
  0x20   :  { %p764_p0 = por %p763_p13, %p762_p12 }
  0x22   :  { %p765_p1 = pnand %p764_p0, %p758_p11 }
  0x24   :  { %768 = shalt.err (!%p765_p1)
}
  0x25   :  { %29 = dma.hbm_to_vmem [thread:$0]  %s1038_s0, 128, %s878_s10, [#allocation4], %s821_s18, %s821_s18, %s822_s19  }
  0x26   :  { %s823_s9 = smov [#allocation8]   ;;  %s769_s14 = scalar_lea.hbm %s1042_s4, 1024 }
  0x27   :  { %s51_s11 = sshll.u32 %s823_s9, 4  ;;  %p770_p2 = scmp.ne.s32.totalorder %s1042_s4, %s769_s14  ;;  %s52_s11 = int_to_ptr.vmem [resolvable:$true] %s51_s11 }
  0x28   :  { %p773_p3 = scmp.lt.u32.totalorder %s769_s14, %s1042_s4 }
  0x2a   :  { %p775_p4 = pnand %p773_p3, %p770_p2 }
  0x2c   :  { %778 = shalt.err (!%p775_p4)
}
  0x2d   :  { %s779_s20 = scalar_lea.vmem %s52_s11, 1024  ;;  %p784_p6 = scmp.lt.s32.totalorder %s52_s11, %s52_s11 }
  0x2e   :  { %p780_p5 = scmp.ne.s32.totalorder %s52_s11, %s779_s20  ;;  %p785_p7 = scmp.lt.s32.totalorder %s779_s20, %s779_s20 }
  0x30   :  { %p786_p8 = por %p785_p7, %p784_p6 }
  0x32   :  { %p787_p9 = pnand %p786_p8, %p780_p5 }
  0x34   :  { %790 = shalt.err (!%p787_p9)
}
  0x35   :  { %57 = dma.hbm_to_vmem [thread:$0]  %s1042_s4, 1024, %s52_s11, [#allocation7], %s821_s18, %s821_s18, %s822_s19  }
  0x36   :  { %813 = dma.done.wait [#allocation4], 128  }
  0x37   :  { %814 = vsyncadd [#allocation4], 4294967168 }
  0x38   :  { %815 = dma.done.wait [#allocation7], 1152  }
  0x39   :  { %816 = vsyncadd [#allocation7], 4294966144  ;;  %v824_v1 = vmov 0.0   ;;  %vm825_vm0 = vmmov 0   ;;  %v674_v2 = vld [vmem:[%s1040_s2] sm:$0xff]   ;;  %vm117_vm1 = vcmask 130048  }
  0x3a   :  { %617 = vmatprep.subr.bf16.mxu0 %v824_v1  ;;  %619 = vmatprep.mubr.msk.bf16.mxu0 %vm825_vm0, %v824_v1  ;;  %v675_v3 = vld [vmem:[#allocation3] sm:$0xff]   ;;  %v676_v4 = vld [vmem:[#allocation8] sm:$0xff]   ;;  %v677_v5 = vld [vmem:[#allocation8 + $0x8] sm:$0xff]   ;;  %v826_v48 = vmov 0  }
  0x3b   :  { %623 = vmatprep.subr.bf16.mxu1 %v824_v1  ;;  %639 = vmatprep.mubr.msk.bf16.mxu1 %vm825_vm0, %v824_v1  ;;  %v678_v6 = vld [vmem:[#allocation8 + $0x10] sm:$0xff]   ;;  %v679_v7 = vld [vmem:[#allocation8 + $0x18] sm:$0xff]   ;;  %v680_v8 = vld [vmem:[#allocation8 + $0x20] sm:$0xff]  }
  0x3c   :  { %618 = vmatpush3.bf16.msra.mxu0 %v674_v2  ;;  %624 = vmatpush3.bf16.msra.mxu1 %v676_v4  ;;  %v681_v9 = vld [vmem:[#allocation8 + $0x28] sm:$0xff]   ;;  %v682_v10 = vld [vmem:[#allocation8 + $0x30] sm:$0xff]   ;;  %v683_v11 = vld [vmem:[#allocation8 + $0x38] sm:$0xff]  }
  0x3d   :  { %643 = vmatprep.subr.bf16.mxu0 %v824_v1  ;;  %625 = vmatprep.subr.bf16.mxu1 %v824_v1  ;;  %v581_v12 = vld [vmem:[%s1041_s3] ss:$0 sm:$0xff]  ;;  %v684_v32 = vld [vmem:[#allocation6] sm:$0xff]   ;;  %s827_s3 = smov [#allocation9]  }
  0x3e   :  { %v585_v22 = vld [vmem:[%s1043_s5] ss:$0 sm:$0xff]  ;;  %673 = vset.pattern.permute.xlu1 %v826_v48  ;;  %672 = vset.pattern.permute.xlu0 %v826_v48  ;;  %s568_s5 = sshll.u32 %s827_s3, 4  ;;  %s569_s5 = int_to_ptr.vmem [resolvable:$true] %s568_s5 }
  0x3f   :  { %620 = vmatmul.mubr.msk.bf16.vlgmr.msra.gmra.mrb[0].mxu0 %vm117_vm1, %v675_v3  ;;  %v959_v24 = vld [vmem:[%s1044_s6] ss:$0 sm:$0xff]  ;;  %s791_s6 = scalar_lea.vmem %s569_s5, 256  ;;  %p796_p11 = scmp.lt.s32.totalorder %s569_s5, %s569_s5 }
  0x40   :  { %645 = vmatprep.mubr.msk.bf16.mxu0 %vm825_vm0, %v824_v1  ;;  %626 = vmatpush3.bf16.msra.mxu1 %v677_v5  ;;  %v1000_v51 = vld [vmem:[#allocation2] ss:$0 sm:$0xff]  ;;  %p792_p10 = scmp.ne.s32.totalorder %s569_s5, %s791_s6  ;;  %p797_p12 = scmp.lt.s32.totalorder %s791_s6, %s791_s6 }
  0x41   :  { %627 = vmatprep.subr.bf16.mxu1 %v824_v1 }
  0x42   :  { %p798_p13 = por %p797_p12, %p796_p11 }
  0x44   :  { %628 = vmatpush3.bf16.msra.mxu1 %v678_v6  ;;  %p799_p0 = pnand %p798_p13, %p792_p10 }
  0x45   :  { %629 = vmatprep.subr.bf16.mxu1 %v824_v1 }
  0x48   :  { %630 = vmatpush3.bf16.msra.mxu1 %v679_v7 }
  0x49   :  { %631 = vmatprep.subr.bf16.mxu1 %v824_v1 }
  0x4c   :  { %632 = vmatpush3.bf16.msra.mxu1 %v680_v8 }
  0x4d   :  { %633 = vmatprep.subr.bf16.mxu1 %v824_v1 }
  0x50   :  { %634 = vmatpush3.bf16.msra.mxu1 %v681_v9 }
  0x51   :  { %635 = vmatprep.subr.bf16.mxu1 %v824_v1 }
  0x54   :  { %636 = vmatpush3.bf16.msra.mxu1 %v682_v10 }
  0x55   :  { %637 = vmatprep.subr.bf16.mxu1 %v824_v1 }
  0x58   :  { %638 = vmatpush3.bf16.msra.mxu1 %v683_v11 }
 0x112   :  { %v155_v13 = vpop.f32.mrb[0].mxu0 }
 0x113   :  { %v156_v14 = vadd.f32 %v581_v12, %v155_v13  ;;  %v621_v15 = vpop.f32.mrb[1].mxu0 }
 0x114   :  { %v158_v16 = vpop.f32.mrb[2].mxu0 }
 0x115   :  { %v159_v17 = vadd.f32 %v581_v12, %v158_v16  ;;  %v622_v18 = vpop.f32.mrb[3].mxu0  ;;  %v162_v19 = vmax.f32 %v156_v14, 0.0 }
 0x117   :  { %v163_v20 = vmax.f32 %v159_v17, 0.0 }
 0x119   :  { %v164_v21 = vpack.c.bf16 %v163_v20, %v162_v19 }
 0x11b   :  { %640 = vmatmul.mubr.bf16.vlgmr.msra.gmra.mrb[0].mxu1 %v164_v21 }
 0x1ee   :  { %v253_v23 = vpop.f32.mrb[0].mxu1 }
 0x1ef   :  { %v961_v25 = vadd.f32 %v585_v22, %v253_v23  ;;  %v641_v26 = vpop.f32.mrb[1].mxu1 }
 0x1f0   :  { %v256_v27 = vpop.f32.mrb[2].mxu1 }
 0x1f1   :  { %v963_v28 = vadd.f32 %v585_v22, %v256_v27  ;;  %v642_v29 = vpop.f32.mrb[3].mxu1  ;;  %v266_v30 = vmul.f32 %v959_v24, %v961_v25 }
 0x1f3   :  { %v304_v31 = vpack.c.bf16 %v963_v28, %v961_v25  ;;  %268 = vadd.xlane.f32.xlu0 %v266_v30  ;;  %v267_v33 = vmul.f32 %v959_v24, %v963_v28 }
 0x1f5   :  { %644 = vmatpush3.bf16.msra.mxu0 %v304_v31 }
 0x1f6   :  { %649 = vmatprep.subr.bf16.mxu0 %v824_v1 }
 0x1f7   :  { %270 = vadd.xlane.f32.xlu0 %v267_v33 }
 0x1f8   :  { %646 = vmatmul.mubr.msk.bf16.vlgmr.msra.gmra.mrb[4].mxu0 %vm117_vm1, %v684_v32 }
 0x1f9   :  { %651 = vmatprep.mubr.msk.bf16.mxu0 %vm825_vm0, %v824_v1 }
 0x280   :  { %v269_v49 = vpop.xlane.xlu0 %268 }
 0x281   :  { %v278_v54 = vadd.f32 %v1000_v51, %v269_v49 }
 0x283   :  { %v280_v58 = vsub.f32 0.0, %v278_v54 }
 0x284   :  { %v271_v50 = vpop.xlane.xlu0 %270 }
 0x285   :  { %v279_v53 = vadd.f32 %v1000_v51, %v271_v50  ;;  %v282_v63 = vmul.f32 1.442695, %v280_v58 }
 0x287   :  { %v281_v55 = vsub.f32 0.0, %v279_v53 }
 0x289   :  { %v284_v59 = vmul.f32 1.442695, %v281_v55 }
 0x28b   :  { %685 = vpow2.f32 %v284_v59 }
 0x28c   :  { %687 = vpow2.f32 %v282_v63 }
 0x295   :  { %v686_v15 = vpop.eup %685 }
 0x296   :  { %v688_v17 = vpop.eup %687  ;;  %v287_v18 = vadd.f32 1.0, %v686_v15 }
 0x297   :  { %v286_v20 = vadd.f32 1.0, %v688_v17 }
 0x2cb   :  { %v975_v34 = vpop.f32.mrb[4].mxu0 }
 0x2cc   :  { %v647_v35 = vpop.f32.mrb[5].mxu0  ;;  %v354_v36 = vmul.f32 %v959_v24, %v975_v34 }
 0x2cd   :  { %v979_v37 = vpop.f32.mrb[6].mxu0 }
 0x2ce   :  { %v386_v38 = vpack.c.bf16 %v979_v37, %v975_v34  ;;  %356 = vadd.xlane.f32.xlu1 %v354_v36  ;;  %v648_v39 = vpop.f32.mrb[7].mxu0  ;;  %v355_v40 = vmul.f32 %v959_v24, %v979_v37 }
 0x2d0   :  { %650 = vmatpush3.bf16.msra.mxu0 %v386_v38 }
 0x2d1   :  { %655 = vmatprep.subr.bf16.mxu0 %v824_v1 }
 0x2d2   :  { %358 = vadd.xlane.f32.xlu1 %v355_v40 }
 0x2d3   :  { %652 = vmatmul.mubr.msk.bf16.vlgmr.msra.gmra.mrb[8].mxu0 %vm117_vm1, %v684_v32 }
 0x2d4   :  { %657 = vmatprep.mubr.msk.bf16.mxu0 %vm825_vm0, %v824_v1 }
 0x35b   :  { %v357_v52 = vpop.xlane.xlu1 %356 }
 0x35c   :  { %v360_v56 = vadd.f32 %v1000_v51, %v357_v52 }
 0x35e   :  { %v362_v60 = vsub.f32 0.0, %v360_v56 }
 0x35f   :  { %v359_v57 = vpop.xlane.xlu1 %358 }
 0x360   :  { %v361_v61 = vadd.f32 %v1000_v51, %v359_v57  ;;  %v364_v0 = vmul.f32 1.442695, %v362_v60 }
 0x362   :  { %v363_v1 = vsub.f32 0.0, %v361_v61  ;;  %689 = vpow2.f32 %v364_v0 }
 0x364   :  { %v366_v4 = vmul.f32 1.442695, %v363_v1 }
 0x366   :  { %691 = vpow2.f32 %v366_v4  ;;  %v534_v4 = vlaneseq }
 0x36c   :  { %v690_v19 = vpop.eup %689 }
 0x36d   :  { %v368_v21 = vadd.f32 1.0, %v690_v19 }
 0x370   :  { %v692_v22 = vpop.eup %691 }
 0x371   :  { %v369_v23 = vadd.f32 1.0, %v692_v22 }
 0x3a6   :  { %v989_v41 = vpop.f32.mrb[8].mxu0 }
 0x3a7   :  { %v653_v42 = vpop.f32.mrb[9].mxu0  ;;  %v428_v43 = vmul.f32 %v959_v24, %v989_v41 }
 0x3a8   :  { %v993_v44 = vpop.f32.mrb[10].mxu0 }
 0x3a9   :  { %v460_v45 = vpack.c.bf16 %v993_v44, %v989_v41  ;;  %430 = vadd.xlane.f32.xlu0 %v428_v43  ;;  %v654_v46 = vpop.f32.mrb[11].mxu0  ;;  %v429_v47 = vmul.f32 %v959_v24, %v993_v44 }
 0x3ab   :  { %656 = vmatpush3.bf16.msra.mxu0 %v460_v45  ;;  %432 = vadd.xlane.f32.xlu1 %v429_v47 }
 0x3ae   :  { %658 = vmatmul.mubr.msk.bf16.vlgmr.msra.gmra.mrb[12].mxu0 %vm117_vm1, %v684_v32 }
 0x436   :  { %v431_v62 = vpop.xlane.xlu0 %430 }
 0x437   :  { %v434_v2 = vadd.f32 %v1000_v51, %v431_v62 }
 0x438   :  { %v433_v3 = vpop.xlane.xlu1 %432 }
 0x439   :  { %v436_v5 = vsub.f32 0.0, %v434_v2  ;;  %v435_v6 = vadd.f32 %v1000_v51, %v433_v3 }
 0x43b   :  { %v438_v10 = vmul.f32 1.442695, %v436_v5  ;;  %v437_v11 = vsub.f32 0.0, %v435_v6  ;;  %v535_v5 = vand.u32 127, %v534_v4 }
 0x43d   :  { %693 = vpow2.f32 %v438_v10  ;;  %v440_v16 = vmul.f32 1.442695, %v437_v11  ;;  %vm536_vm2 = vcmp.lt.s32.totalorder %v535_v5, 8 }
 0x43f   :  { %695 = vpow2.f32 %v440_v16 }
 0x440   :  { %697 = vrcp.f32 %v287_v18 }
 0x441   :  { %699 = vrcp.f32 %v286_v20 }
 0x442   :  { %701 = vrcp.f32 %v368_v21 }
 0x443   :  { %703 = vrcp.f32 %v369_v23 }
 0x447   :  { %v694_v26 = vpop.eup %693 }
 0x448   :  { %v442_v27 = vadd.f32 1.0, %v694_v26 }
 0x44a   :  { %705 = vrcp.f32 %v442_v27 }
 0x481   :  { %v1008_v7 = vpop.f32.mrb[12].mxu0 }
 0x482   :  { %v659_v8 = vpop.f32.mrb[13].mxu0  ;;  %v502_v9 = vmul.f32 %v959_v24, %v1008_v7 }
 0x483   :  { %v1012_v12 = vpop.f32.mrb[14].mxu0 }
 0x484   :  { %504 = vadd.xlane.f32.xlu0 %v502_v9  ;;  %v503_v13 = vmul.f32 %v959_v24, %v1012_v12  ;;  %v660_v14 = vpop.f32.mrb[15].mxu0  ;;  %v696_v24 = vpop.eup %695 }
 0x485   :  { %v698_v29 = vpop.eup %697  ;;  %v443_v30 = vadd.f32 1.0, %v696_v24 }
 0x486   :  { %506 = vadd.xlane.f32.xlu1 %v503_v13  ;;  %v700_v31 = vpop.eup %699 }
 0x487   :  { %v702_v32 = vpop.eup %701  ;;  %707 = vrcp.f32 %v443_v30 }
 0x488   :  { %v704_v33 = vpop.eup %703 }
 0x489   :  { %v706_v35 = vpop.eup %705 }
 0x491   :  { %v708_v36 = vpop.eup %707 }
 0x497   :  { %297 = vperm.xlu1 %673, %v698_v29  }
 0x49a   :  { %292 = vperm.xlu0 %672, %v700_v31  }
 0x49b   :  { %374 = vperm.xlu1 %673, %v702_v32  }
 0x49f   :  { %379 = vperm.xlu1 %673, %v704_v33  }
 0x4a3   :  { %448 = vperm.xlu1 %673, %v706_v35  }
 0x4a7   :  { %453 = vperm.xlu1 %673, %v708_v36  }
 0x511   :  { %v505_v38 = vpop.xlane.xlu0 %504 }
 0x512   :  { %v508_v39 = vadd.f32 %v1000_v51, %v505_v38 }
 0x513   :  { %v507_v40 = vpop.xlane.xlu1 %506 }
 0x514   :  { %v510_v42 = vsub.f32 0.0, %v508_v39  ;;  %v509_v43 = vadd.f32 %v1000_v51, %v507_v40 }
 0x516   :  { %v512_v45 = vmul.f32 1.442695, %v510_v42  ;;  %v511_v46 = vsub.f32 0.0, %v509_v43 }
 0x517   :  { %v298_v47 = vpop.permute.xlu1 %297 }
 0x518   :  { %709 = vpow2.f32 %v512_v45  ;;  %v514_v48 = vmul.f32 1.442695, %v511_v46  ;;  %v301_v62 = vmul.f32 %v298_v47, %v963_v28 }
 0x519   :  { %v293_v50 = vpop.permute.xlu0 %292 }
 0x51a   :  { %711 = vpow2.f32 %v514_v48  ;;  %v300_v55 = vmul.f32 %v293_v50, %v961_v25 }
 0x51b   :  { %v375_v49 = vpop.permute.xlu1 %374 }
 0x51c   :  { %v382_v53 = vmul.f32 %v375_v49, %v975_v34 }
 0x51e   :  { %v384_v59 = vadd.f32 %v382_v53, %v300_v55 }
 0x51f   :  { %v380_v52 = vpop.permute.xlu1 %379 }
 0x520   :  { %v383_v51 = vmul.f32 %v380_v52, %v979_v37 }
 0x522   :  { %v710_v54 = vpop.eup %709  ;;  %v385_v1 = vadd.f32 %v383_v51, %v301_v62 }
 0x523   :  { %v516_v56 = vadd.f32 1.0, %v710_v54  ;;  %v449_v57 = vpop.permute.xlu1 %448 }
 0x524   :  { %v712_v58 = vpop.eup %711  ;;  %v456_v60 = vmul.f32 %v449_v57, %v989_v41 }
 0x525   :  { %713 = vrcp.f32 %v516_v56  ;;  %v517_v61 = vadd.f32 1.0, %v712_v58 }
 0x526   :  { %v458_v63 = vadd.f32 %v456_v60, %v384_v59 }
 0x527   :  { %v454_v0 = vpop.permute.xlu1 %453  ;;  %715 = vrcp.f32 %v517_v61 }
 0x528   :  { %v457_v34 = vmul.f32 %v454_v0, %v993_v44 }
 0x52a   :  { %v459_v2 = vadd.f32 %v457_v34, %v385_v1 }
 0x52f   :  { %v714_v25 = vpop.eup %713 }
 0x530   :  { %522 = vperm.xlu1 %673, %v714_v25  }
 0x531   :  { %v716_v3 = vpop.eup %715 }
 0x534   :  { %527 = vperm.xlu1 %673, %v716_v3  }
 0x5af   :  { %v523_v37 = vpop.permute.xlu1 %522 }
 0x5b0   :  { %v530_v41 = vmul.f32 %v523_v37, %v1008_v7 }
 0x5b2   :  { %v532_v6 = vadd.f32 %v530_v41, %v458_v63 }
 0x5b3   :  { %v528_v8 = vpop.permute.xlu1 %527 }
 0x5b4   :  { %v531_v28 = vmul.f32 %v528_v8, %v1012_v12  ;;  %v537_v9 = vsel %vm536_vm2, %v532_v6, -1e+30 }
 0x5b5   :  { %539 = vmax.xlane.f32.xlu1 %v537_v9 }
 0x5b6   :  { %v533_v10 = vadd.f32 %v531_v28, %v459_v2 }
 0x5b8   :  { %v538_v44 = vsel %vm536_vm2, %v533_v10, -1e+30 }
 0x5b9   :  { %541 = vmax.xlane.f32.xlu0 %v538_v44 }
 0x642   :  { %v540_v11 = vpop.xlane.xlu1 %539 }
 0x643   :  { %v543_v13 = vsub.f32 %v537_v9, %v540_v11  ;;  %v557_v21 = vsub.f32 %v532_v6, %v540_v11 }
 0x645   :  { %v545_v14 = vmul.f32 1.442695, %v543_v13 }
 0x646   :  { %v542_v15 = vpop.xlane.xlu0 %541 }
 0x647   :  { %717 = vpow2.f32 %v545_v14  ;;  %v544_v16 = vsub.f32 %v538_v44, %v542_v15  ;;  %v558_v27 = vsub.f32 %v533_v10, %v542_v15 }
 0x649   :  { %v547_v17 = vmul.f32 1.442695, %v544_v16 }
 0x64b   :  { %719 = vpow2.f32 %v547_v17 }
 0x651   :  { %v718_v18 = vpop.eup %717 }
 0x652   :  { %549 = vadd.xlane.f32.xlu0 %v718_v18 }
 0x655   :  { %v720_v7 = vpop.eup %719 }
 0x656   :  { %551 = vadd.xlane.f32.xlu1 %v720_v7 }
 0x6df   :  { %v550_v19 = vpop.xlane.xlu0 %549 }
 0x6e0   :  { %721 = vlog2.f32 %v550_v19 }
 0x6e3   :  { %v552_v12 = vpop.xlane.xlu1 %551 }
 0x6e4   :  { %723 = vlog2.f32 %v552_v12 }
 0x6ea   :  { %v722_v20 = vpop.eup %721 }
 0x6eb   :  { %v554_v22 = vmul.f32 0.6931472, %v722_v20 }
 0x6ed   :  { %v559_v23 = vsub.f32 %v557_v21, %v554_v22 }
 0x6ee   :  { %v724_v26 = vpop.eup %723 }
 0x6ef   :  { %561 = vst [vmem:[#allocation9] sm:$0xff] %v559_v23  ;;  %v556_v24 = vmul.f32 0.6931472, %v724_v26 }
 0x6f1   :  { %v560_v29 = vsub.f32 %v558_v27, %v556_v24 }
 0x6f3   :  { %562 = vst [vmem:[#allocation9 + $0x8] sm:$0xff] %v560_v29 }
 0x6f4   :  { %802 = shalt.err (!%p799_p0)
}
 0x6f5   :  { %s803_s27 = scalar_lea.hbm %s1046_s8, 256 }
 0x6f6   :  { %p804_p1 = scmp.ne.s32.totalorder %s1046_s8, %s803_s27  ;;  %p807_p2 = scmp.lt.u32.totalorder %s803_s27, %s1046_s8 }
 0x6f8   :  { %p809_p3 = pnand %p807_p2, %p804_p1 }
 0x6fa   :  { %812 = shalt.err (!%p809_p3)
}
 0x6fb   :  { %s828_s9 = smov 128   ;;  %s829_s11 = smov 8  }
 0x6fc   :  { %574 = dma.vmem_to_hbm [thread:$0]  %s569_s5, 256, %s1046_s8, [#allocation5], %s828_s9, %s828_s9, %s829_s11  }
 0x6fd   :  { %817 = dma.done.wait [#allocation5], 256  }
 0x6fe   :  { %818 = vsyncadd [#allocation5], 4294967040 }
 0x6ff   :  { %578 = vsyncpa [#allocation4], 1 }
 0x700   :  { %579 = vsyncpa [#allocation7], 1 }
 0x701   :  { %580 = vsyncpa [#allocation5], 1 }

</bundles_post_ra>
